<compile_context>
chip_gen: v6e
topology: v6e:2x2x1
jax: 0.10.0
libtpu: 0.0.40
codegen_flags: <defaults>
</compile_context>

<pallas_src>
import functools

import jax
import jax.numpy as jnp
from jax.experimental import pallas as pl
from jax.experimental.pallas import tpu as pltpu  # noqa: F401  (kept for TPU-specific tuning hooks)


def _round_up(x, m):
    return ((x + m - 1) // m) * m


def prepare_params(params):
    """One-time parameter prep: transpose / concat / zero-pad to 128-aligned
    lane shapes so the per-call hot path has no layout HLOs or masked vregs."""
    emb_table = params['emb_table']            # (V, E)
    conv_w = params['conv_w']                  # (E, E, 2)  (out, in, k)
    conv_b = params['conv_b']                  # (E,)
    fc1_w = params['fc1_w']                    # (H, E)
    fc1_b = params['fc1_b']                    # (H,)
    fc2_w = params['fc2_w']                    # (M, H)
    fc2_b = params['fc2_b']                    # (M,)

    V, E = emb_table.shape
    H = fc1_w.shape[0]
    M = fc2_w.shape[0]
    Vp, Ep, Hp, Mp = (_round_up(d, 128) for d in (V, E, H, M))

    def pad2(a, rows, cols):
        out = jnp.zeros((rows, cols), jnp.float32)
        return out.at[:a.shape[0], :a.shape[1]].set(a.astype(jnp.float32))

    emb_p = pad2(emb_table, Vp, Ep)
    # Conv1d(k=2), channels-last: z_k = emb @ W[:, :, k].T.  Concatenate the two
    # kernel slices into one (Ep, 2*Ep) matrix -> single 256-wide MXU push.
    wcat = jnp.zeros((Ep, 2 * Ep), jnp.float32)
    wcat = wcat.at[:E, :E].set(conv_w[:, :, 0].T.astype(jnp.float32))
    wcat = wcat.at[:E, Ep:Ep + E].set(conv_w[:, :, 1].T.astype(jnp.float32))
    cb_p = pad2(conv_b.reshape(1, E), 1, Ep)
    fc1_wt_p = pad2(fc1_w.T, Ep, Hp)
    fc1_b_p = pad2(fc1_b.reshape(1, H), 1, Hp)
    fc2_wt_p = pad2(fc2_w.T, Hp, Mp)
    fc2_b_p = pad2(fc2_b.reshape(1, M), 1, Mp)

    prepped = dict(emb_p=emb_p, wcat=wcat, cb_p=cb_p,
                   fc1_wt_p=fc1_wt_p, fc1_b_p=fc1_b_p,
                   fc2_wt_p=fc2_wt_p, fc2_b_p=fc2_b_p)
    dims = dict(V=V, E=E, H=H, M=M, Vp=Vp, Ep=Ep, Hp=Hp, Mp=Mp)
    return prepped, dims


def _make_kernel(B, L, Vp, Ep, Hp, Mp):
    BL = B * L

    def kernel(tok_ref, emb_ref, wcat_ref, cb_ref,
               fc1w_ref, fc1b_ref, fc2w_ref, fc2b_ref, out_ref):
        f32 = jnp.float32

        # ---- fused embedding gather: one-hot matmul on the MXU ----
        tok = tok_ref[...]                                        # (BL, 1) i32
        vocab_ids = jax.lax.broadcasted_iota(jnp.int32, (BL, Vp), 1)
        one_hot = (vocab_ids == tok).astype(f32)                  # (BL, Vp)
        emb = jnp.dot(one_hot, emb_ref[...],
                      preferred_element_type=f32)                 # (BL, Ep)

        # ---- Conv1d(k=2): single flat (BL, Ep) @ (Ep, 2*Ep) matmul ----
        z = jnp.dot(emb, wcat_ref[...], preferred_element_type=f32)
        z0 = z[:, :Ep]                      # W0 contribution at position t
        z1 = z[:, Ep:]                      # W1 contribution at position t

        # Align z1[t+1] with row t via a 0/1 shift matrix (stays 2-D / tile
        # aligned; no sublane slices of matmul inputs, no roll).
        r = jax.lax.broadcasted_iota(jnp.int32, (BL, BL), 0)
        c = jax.lax.broadcasted_iota(jnp.int32, (BL, BL), 1)
        shift = (c == r + 1).astype(f32)                          # (BL, BL)
        z1s = jnp.dot(shift, z1, preferred_element_type=f32)      # (BL, Ep)

        y = jnp.maximum(z0 + z1s + cb_ref[...], 0.0)              # (BL, Ep)

        # ---- per-sequence reductions (bow + bag_of_bigram) as tiny 0/1
        # matmuls.  Rows at the end of a sequence get weight 0 in sum_valid,
        # so their post-ReLU garbage never contributes. ----
        br = jax.lax.broadcasted_iota(jnp.int32, (B, BL), 0)
        bc = jax.lax.broadcasted_iota(jnp.int32, (B, BL), 1)
        in_seq = (bc >= br * L) & (bc < (br + 1) * L)
        sum_all = in_seq.astype(f32)                              # (B, BL)
        sum_valid = (in_seq & (bc != (br + 1) * L - 1)).astype(f32)

        feat = (jnp.dot(sum_all, emb, preferred_element_type=f32)
                + jnp.dot(sum_valid, y, preferred_element_type=f32))  # (B, Ep)

        # ---- MLP head ----
        hidden = jnp.maximum(
            jnp.dot(feat, fc1w_ref[...], preferred_element_type=f32)
            + fc1b_ref[...], 0.0)                                 # (B, Hp)
        out_ref[...] = (
            jnp.dot(hidden, fc2w_ref[...], preferred_element_type=f32)
            + fc2b_ref[...])                                      # (B, Mp)

    return kernel


def language_module_forward(token_ids, prepped, dims):
    """token_ids: (B, L) int32.  Returns (B, message_size) f32."""
    B, L = token_ids.shape
    BL = B * L
    Vp, Ep, Hp, Mp, M = (dims[k] for k in ('Vp', 'Ep', 'Hp', 'Mp', 'M'))

    tok2d = token_ids.reshape(BL, 1).astype(jnp.int32)
    kernel = _make_kernel(B, L, Vp, Ep, Hp, Mp)

    full = lambda shape: pl.BlockSpec(shape, lambda: (0,) * len(shape))
    out_p = pl.pallas_call(
        kernel,
        out_shape=jax.ShapeDtypeStruct((B, Mp), jnp.float32),
        in_specs=[
            full((BL, 1)),          # token ids
            full((Vp, Ep)),         # padded embedding table
            full((Ep, 2 * Ep)),     # [W0^T | W1^T] concatenated conv weight
            full((1, Ep)),          # conv bias
            full((Ep, Hp)),         # fc1 W^T
            full((1, Hp)),          # fc1 b
            full((Hp, Mp)),         # fc2 W^T
            full((1, Mp)),          # fc2 b
        ],
        out_specs=full((B, Mp)),
        # No grid: everything fits in VMEM; add a "parallel" batch grid only
        # if B scales to thousands (v7x 2 TCs / v6e megacore).
    )(tok2d, prepped['emb_p'], prepped['wcat'], prepped['cb_p'],
      prepped['fc1_wt_p'], prepped['fc1_b_p'], prepped['fc2_wt_p'],
      prepped['fc2_b_p'])
    return out_p[:, :M]   # drop lane padding; kernel store stays 128-lane dense


def _reference(token_ids, params):
    emb = params['emb_table'][token_ids]                       # (B, L, E)
    bow = emb.sum(axis=1)
    w0 = params['conv_w'][:, :, 0]                             # (out, in)
    w1 = params['conv_w'][:, :, 1]
    x0 = emb[:, :-1, :]
    x1 = emb[:, 1:, :]
    y = (jnp.einsum('ble,oe->blo', x0, w0)
         + jnp.einsum('ble,oe->blo', x1, w1)
         + params['conv_b'][None, None, :])
    y = jnp.maximum(y, 0.0)
    bow = bow + y.sum(axis=1)
    hidden = jnp.maximum(bow @ params['fc1_w'].T + params['fc1_b'], 0.0)
    return hidden @ params['fc2_w'].T + params['fc2_b']


if __name__ == "__main__":
    message_size = 32
    vocabulary_size = 50
    embedding_size = 100
    B, L = 2, 8

    key = jax.random.PRNGKey(0)
    ks = jax.random.split(key, 8)
    params = {
        'emb_table': jax.random.normal(ks[0], (vocabulary_size, embedding_size),
                                       jnp.float32),
        'conv_w': 0.1 * jax.random.normal(ks[1],
                                          (embedding_size, embedding_size, 2),
                                          jnp.float32),
        'conv_b': 0.1 * jax.random.normal(ks[2], (embedding_size,), jnp.float32),
        'fc1_w': 0.1 * jax.random.normal(ks[3], (200, embedding_size), jnp.float32),
        'fc1_b': 0.1 * jax.random.normal(ks[4], (200,), jnp.float32),
        'fc2_w': 0.1 * jax.random.normal(ks[5], (message_size, 200), jnp.float32),
        'fc2_b': 0.1 * jax.random.normal(ks[6], (message_size,), jnp.float32),
    }
    token_ids = jax.random.randint(ks[7], (B, L), 0, vocabulary_size, jnp.int32)

    # One-time weight layout prep (hoisted out of the per-call hot path).
    prepped, dims = prepare_params(params)
    fwd = jax.jit(functools.partial(language_module_forward,
                                    prepped=prepped, dims=dims))

    out = jax.block_until_ready(fwd(token_ids))

    ref = _reference(token_ids, params)
    assert out.shape == (B, message_size)
    assert jnp.allclose(out, ref, atol=1e-3, rtol=1e-3), "mismatch vs reference"
    print("KERNEL_OK")
</pallas_src>

<mosaic_0001>
module attributes {stable_mosaic.version = 11 : i64} {
  func.func @kernel(%arg0: memref<16x1xi32, #tpu.memory_space<vmem>>, %arg1: memref<128x128xf32, #tpu.memory_space<vmem>>, %arg2: memref<128x256xf32, #tpu.memory_space<vmem>>, %arg3: memref<1x128xf32, #tpu.memory_space<vmem>>, %arg4: memref<128x256xf32, #tpu.memory_space<vmem>>, %arg5: memref<1x256xf32, #tpu.memory_space<vmem>>, %arg6: memref<256x128xf32, #tpu.memory_space<vmem>>, %arg7: memref<1x128xf32, #tpu.memory_space<vmem>>, %arg8: memref<2x128xf32, #tpu.memory_space<vmem>>) attributes {dimension_semantics = [], scalar_prefetch = 0 : i64, scratch_operands = 0 : i64, tpu.core_type = #tpu.core_type<tc>} {
    %c0 = arith.constant 0 : index
    %c0_0 = arith.constant 0 : index
    %0 = vector.load %arg0[%c0, %c0_0] : memref<16x1xi32, #tpu.memory_space<vmem>>, vector<16x1xi32>
    %1 = tpu.iota {dimensions = array<i32: 1>} : vector<16x128xi32>
    %2 = vector.broadcast %0 : vector<16x1xi32> to vector<16x128xi32>
    %3 = arith.cmpi eq, %1, %2 : vector<16x128xi32>
    %4 = arith.extui %3 : vector<16x128xi1> to vector<16x128xi32>
    %5 = arith.sitofp %4 : vector<16x128xi32> to vector<16x128xf32>
    %c0_1 = arith.constant 0 : index
    %c0_2 = arith.constant 0 : index
    %6 = vector.load %arg1[%c0_1, %c0_2] : memref<128x128xf32, #tpu.memory_space<vmem>>, vector<128x128xf32>
    %cst = arith.constant dense<0.000000e+00> : vector<16x128xf32>
    %7 = tpu.matmul %5, %6, %cst {dimension_numbers = #tpu.dot_dimension_numbers<[1], [0], [0], [1], [0, 0, 1, 1], [], []>} : vector<16x128xf32>, vector<128x128xf32>, vector<16x128xf32> -> vector<16x128xf32>
    %c0_3 = arith.constant 0 : index
    %c0_4 = arith.constant 0 : index
    %8 = vector.load %arg2[%c0_3, %c0_4] : memref<128x256xf32, #tpu.memory_space<vmem>>, vector<128x256xf32>
    %cst_5 = arith.constant dense<0.000000e+00> : vector<16x256xf32>
    %9 = tpu.matmul %7, %8, %cst_5 {dimension_numbers = #tpu.dot_dimension_numbers<[1], [0], [0], [1], [0, 0, 1, 1], [], []>} : vector<16x128xf32>, vector<128x256xf32>, vector<16x256xf32> -> vector<16x256xf32>
    %10 = vector.extract_strided_slice %9 {offsets = [0, 0], sizes = [16, 128], strides = [1, 1]} : vector<16x256xf32> to vector<16x128xf32>
    %11 = vector.extract_strided_slice %9 {offsets = [0, 128], sizes = [16, 128], strides = [1, 1]} : vector<16x256xf32> to vector<16x128xf32>
    %12 = tpu.iota {dimensions = array<i32: 0>} : vector<16x16xi32>
    %13 = tpu.iota {dimensions = array<i32: 1>} : vector<16x16xi32>
    %c1_i32 = arith.constant 1 : i32
    %14 = vector.broadcast %c1_i32 : i32 to vector<16x16xi32>
    %15 = arith.addi %12, %14 : vector<16x16xi32>
    %16 = arith.cmpi eq, %13, %15 : vector<16x16xi32>
    %17 = arith.extui %16 : vector<16x16xi1> to vector<16x16xi32>
    %18 = arith.sitofp %17 : vector<16x16xi32> to vector<16x16xf32>
    %cst_6 = arith.constant dense<0.000000e+00> : vector<16x128xf32>
    %19 = tpu.matmul %18, %11, %cst_6 {dimension_numbers = #tpu.dot_dimension_numbers<[1], [0], [0], [1], [0, 0, 1, 1], [], []>} : vector<16x16xf32>, vector<16x128xf32>, vector<16x128xf32> -> vector<16x128xf32>
    %20 = arith.addf %10, %19 : vector<16x128xf32>
    %c0_7 = arith.constant 0 : index
    %c0_8 = arith.constant 0 : index
    %21 = vector.load %arg3[%c0_7, %c0_8] : memref<1x128xf32, #tpu.memory_space<vmem>>, vector<1x128xf32>
    %22 = vector.broadcast %21 : vector<1x128xf32> to vector<16x128xf32>
    %23 = arith.addf %20, %22 : vector<16x128xf32>
    %cst_9 = arith.constant 0.000000e+00 : f32
    %24 = vector.broadcast %cst_9 : f32 to vector<16x128xf32>
    %25 = arith.maximumf %23, %24 : vector<16x128xf32>
    %26 = tpu.iota {dimensions = array<i32: 0>} : vector<2x16xi32>
    %27 = tpu.iota {dimensions = array<i32: 1>} : vector<2x16xi32>
    %c8_i32 = arith.constant 8 : i32
    %28 = vector.broadcast %c8_i32 : i32 to vector<2x16xi32>
    %29 = arith.muli %26, %28 : vector<2x16xi32>
    %30 = arith.cmpi sge, %27, %29 : vector<2x16xi32>
    %c1_i32_10 = arith.constant 1 : i32
    %31 = vector.broadcast %c1_i32_10 : i32 to vector<2x16xi32>
    %32 = arith.addi %26, %31 : vector<2x16xi32>
    %c8_i32_11 = arith.constant 8 : i32
    %33 = vector.broadcast %c8_i32_11 : i32 to vector<2x16xi32>
    %34 = arith.muli %32, %33 : vector<2x16xi32>
    %35 = arith.cmpi slt, %27, %34 : vector<2x16xi32>
    %36 = arith.andi %30, %35 : vector<2x16xi1>
    %37 = arith.extui %36 : vector<2x16xi1> to vector<2x16xi32>
    %38 = arith.sitofp %37 : vector<2x16xi32> to vector<2x16xf32>
    %c1_i32_12 = arith.constant 1 : i32
    %39 = vector.broadcast %c1_i32_12 : i32 to vector<2x16xi32>
    %40 = arith.addi %26, %39 : vector<2x16xi32>
    %c8_i32_13 = arith.constant 8 : i32
    %41 = vector.broadcast %c8_i32_13 : i32 to vector<2x16xi32>
    %42 = arith.muli %40, %41 : vector<2x16xi32>
    %c1_i32_14 = arith.constant 1 : i32
    %43 = vector.broadcast %c1_i32_14 : i32 to vector<2x16xi32>
    %44 = arith.subi %42, %43 : vector<2x16xi32>
    %45 = arith.cmpi ne, %27, %44 : vector<2x16xi32>
    %46 = arith.andi %36, %45 : vector<2x16xi1>
    %47 = arith.extui %46 : vector<2x16xi1> to vector<2x16xi32>
    %48 = arith.sitofp %47 : vector<2x16xi32> to vector<2x16xf32>
    %cst_15 = arith.constant dense<0.000000e+00> : vector<2x128xf32>
    %49 = tpu.matmul %38, %7, %cst_15 {dimension_numbers = #tpu.dot_dimension_numbers<[1], [0], [0], [1], [0, 0, 1, 1], [], []>} : vector<2x16xf32>, vector<16x128xf32>, vector<2x128xf32> -> vector<2x128xf32>
    %cst_16 = arith.constant dense<0.000000e+00> : vector<2x128xf32>
    %50 = tpu.matmul %48, %25, %cst_16 {dimension_numbers = #tpu.dot_dimension_numbers<[1], [0], [0], [1], [0, 0, 1, 1], [], []>} : vector<2x16xf32>, vector<16x128xf32>, vector<2x128xf32> -> vector<2x128xf32>
    %51 = arith.addf %49, %50 : vector<2x128xf32>
    %c0_17 = arith.constant 0 : index
    %c0_18 = arith.constant 0 : index
    %52 = vector.load %arg4[%c0_17, %c0_18] : memref<128x256xf32, #tpu.memory_space<vmem>>, vector<128x256xf32>
    %cst_19 = arith.constant dense<0.000000e+00> : vector<2x256xf32>
    %53 = tpu.matmul %51, %52, %cst_19 {dimension_numbers = #tpu.dot_dimension_numbers<[1], [0], [0], [1], [0, 0, 1, 1], [], []>} : vector<2x128xf32>, vector<128x256xf32>, vector<2x256xf32> -> vector<2x256xf32>
    %c0_20 = arith.constant 0 : index
    %c0_21 = arith.constant 0 : index
    %54 = vector.load %arg5[%c0_20, %c0_21] : memref<1x256xf32, #tpu.memory_space<vmem>>, vector<1x256xf32>
    %55 = vector.broadcast %54 : vector<1x256xf32> to vector<2x256xf32>
    %56 = arith.addf %53, %55 : vector<2x256xf32>
    %cst_22 = arith.constant 0.000000e+00 : f32
    %57 = vector.broadcast %cst_22 : f32 to vector<2x256xf32>
    %58 = arith.maximumf %56, %57 : vector<2x256xf32>
    %c0_23 = arith.constant 0 : index
    %c0_24 = arith.constant 0 : index
    %59 = vector.load %arg6[%c0_23, %c0_24] : memref<256x128xf32, #tpu.memory_space<vmem>>, vector<256x128xf32>
    %cst_25 = arith.constant dense<0.000000e+00> : vector<2x128xf32>
    %60 = tpu.matmul %58, %59, %cst_25 {dimension_numbers = #tpu.dot_dimension_numbers<[1], [0], [0], [1], [0, 0, 1, 1], [], []>} : vector<2x256xf32>, vector<256x128xf32>, vector<2x128xf32> -> vector<2x128xf32>
    %c0_26 = arith.constant 0 : index
    %c0_27 = arith.constant 0 : index
    %61 = vector.load %arg7[%c0_26, %c0_27] : memref<1x128xf32, #tpu.memory_space<vmem>>, vector<1x128xf32>
    %62 = vector.broadcast %61 : vector<1x128xf32> to vector<2x128xf32>
    %63 = arith.addf %60, %62 : vector<2x128xf32>
    %c0_28 = arith.constant 0 : index
    %c0_29 = arith.constant 0 : index
    %64 = vector.load %arg8[%c0_28, %c0_29] : memref<2x128xf32, #tpu.memory_space<vmem>>, vector<2x128xf32>
    tpu.vector_store %arg8[%c0_28, %c0_29], %63 {strides = array<i32>} : memref<2x128xf32, #tpu.memory_space<vmem>>, vector<2x128xf32>,
    return
  }
}

</mosaic_0001>

<bundles_post_ra>
// kernel: language_module_forward.1
= control target key start
LH: loop header
LB: loop body
LE: loop exit
PB: predicated region body
PF: predicated region fallthrough
CT: control target
= control target key end

     0   :  { %13 = vsyncpa [#allocation3], 0  ;;  %s1183_s0 = inlined_call_operand.vmem [shape: s32[16,1], index: 0, kind: input, shape index: {}]   ;;  %s1184_s1 = inlined_call_operand.hbm [shape: f32[128,128], index: 1, kind: input, shape index: {}]   ;;  %s1185_s2 = inlined_call_operand.hbm [shape: f32[128,256], index: 2, kind: input, shape index: {}]   ;;  %s1186_s3 = inlined_call_operand.vmem [shape: f32[1,128], index: 3, kind: input, shape index: {}]   ;;  %s1187_s4 = inlined_call_operand.hbm [shape: f32[128,256], index: 4, kind: input, shape index: {}]   ;;  %s1188_s5 = inlined_call_operand.vmem [shape: f32[1,256], index: 5, kind: input, shape index: {}]   ;;  %s1189_s6 = inlined_call_operand.hbm [shape: f32[256,128], index: 6, kind: input, shape index: {}]   ;;  %s1190_s7 = inlined_call_operand.vmem [shape: f32[1,128], index: 7, kind: input, shape index: {}]   ;;  %s1191_s8 = inlined_call_operand.hbm [shape: f32[2,128], index: 8, kind: output, shape index: {}]  }
   0x1   :  { %14 = vsyncpa [#allocation6], 0 }
   0x2   :  { %15 = vsyncpa [#allocation9], 0 }
   0x3   :  { %16 = vsyncpa [#allocation4], 0  ;;  %s1065_s27 = smov [#allocation5]  }
   0x4   :  { %s36_s28 = sshll.u32 %s1065_s27, 4  ;;  %s37_s28 = int_to_ptr.vmem [resolvable:$true] %s36_s28 }
   0x5   :  { %s965_s29 = scalar_lea.vmem %s37_s28, 4096  ;;  %p970_p1 = scmp.lt.s32.totalorder %s37_s28, %s37_s28 }
   0x6   :  { %p966_p0 = scmp.ne.s32.totalorder %s37_s28, %s965_s29  ;;  %p971_p2 = scmp.lt.s32.totalorder %s965_s29, %s965_s29 }
   0x8   :  { %p972_p3 = por %p971_p2, %p970_p1 }
   0xa   :  { %p973_p4 = pnand %p972_p3, %p966_p0 }
   0xc   :  { %976 = shalt.err (!%p973_p4)
}
   0xd   :  { %s1066_s30 = smov 256   ;;  %s1067_s9 = smov 16  }
   0xe   :  { %42 = dma.hbm_to_vmem [thread:$0]  %s1185_s2, 4096, %s37_s28, [#allocation6], %s1066_s30, %s1066_s30, %s1067_s9  }
   0xf   :  { %s1068_s12 = smov [#allocation2]  }
  0x10   :  { %s24_s13 = sshll.u32 %s1068_s12, 4  ;;  %s25_s13 = int_to_ptr.vmem [resolvable:$true] %s24_s13 }
  0x11   :  { %s985_s14 = scalar_lea.vmem %s25_s13, 2048  ;;  %p990_p6 = scmp.lt.s32.totalorder %s25_s13, %s25_s13 }
  0x12   :  { %p986_p5 = scmp.ne.s32.totalorder %s25_s13, %s985_s14  ;;  %p991_p7 = scmp.lt.s32.totalorder %s985_s14, %s985_s14 }
  0x14   :  { %p992_p8 = por %p991_p7, %p990_p6 }
  0x16   :  { %p993_p9 = pnand %p992_p8, %p986_p5 }
  0x18   :  { %996 = shalt.err (!%p993_p9)
}
  0x19   :  { %s1069_s15 = smov 128   ;;  %s1070_s16 = smov 8  }
  0x1a   :  { %30 = dma.hbm_to_vmem [thread:$0]  %s1184_s1, 2048, %s25_s13, [#allocation3], %s1069_s15, %s1069_s15, %s1070_s16  }
  0x1b   :  { %s1071_s19 = smov [#allocation7]   ;;  %s1072_s21 = smov [#allocation8]  }
  0x1c   :  { %s50_s20 = sshll.u32 %s1071_s19, 4  ;;  %s64_s2 = sshll.u32 %s1072_s21, 4  ;;  %s51_s20 = int_to_ptr.vmem [resolvable:$true] %s50_s20  ;;  %s65_s2 = int_to_ptr.vmem [resolvable:$true] %s64_s2 }
  0x1d   :  { %s1005_s22 = scalar_lea.vmem %s51_s20, 4096  ;;  %p1010_p11 = scmp.lt.s32.totalorder %s51_s20, %s51_s20 }
  0x1e   :  { %p1006_p10 = scmp.ne.s32.totalorder %s51_s20, %s1005_s22  ;;  %p1011_p12 = scmp.lt.s32.totalorder %s1005_s22, %s1005_s22 }
  0x20   :  { %p1012_p13 = por %p1011_p12, %p1010_p11 }
  0x22   :  { %p1013_p0 = pnand %p1012_p13, %p1006_p10 }
  0x24   :  { %1016 = shalt.err (!%p1013_p0)
}
  0x25   :  { %56 = dma.hbm_to_vmem [thread:$0]  %s1187_s4, 4096, %s51_s20, [#allocation6], %s1066_s30, %s1066_s30, %s1067_s9  }
  0x26   :  { %s1025_s1 = scalar_lea.vmem %s65_s2, 4096  ;;  %p1030_p2 = scmp.lt.s32.totalorder %s65_s2, %s65_s2 }
  0x27   :  { %p1026_p1 = scmp.ne.s32.totalorder %s65_s2, %s1025_s1  ;;  %p1031_p3 = scmp.lt.s32.totalorder %s1025_s1, %s1025_s1 }
  0x29   :  { %p1032_p4 = por %p1031_p3, %p1030_p2 }
  0x2b   :  { %p1033_p5 = pnand %p1032_p4, %p1026_p1 }
  0x2d   :  { %1036 = shalt.err (!%p1033_p5)
}
  0x2e   :  { %70 = dma.hbm_to_vmem [thread:$0]  %s1189_s6, 4096, %s65_s2, [#allocation9], %s1069_s15, %s1069_s15, %s1070_s16  }
  0x2f   :  { %1057 = dma.done.wait [#allocation3], 2048  }
  0x30   :  { %1058 = vsyncadd [#allocation3], 4294965248 }
  0x31   :  { %1059 = dma.done.wait [#allocation6], 8192  }
  0x32   :  { %1060 = vsyncadd [#allocation6], 4294959104 }
  0x33   :  { %1061 = dma.done.wait [#allocation9], 4096  }
  0x34   :  { %1062 = vsyncadd [#allocation9], 4294963200  ;;  %v1073_v0 = vmov 0   ;;  %v85_v1 = vld [vmem:[%s1183_s0] sm:$0xff]  ;;  %v116_v2 = vld [vmem:[#allocation2 + $0x78] sm:$0xff]  ;;  %v87_v49 = vlaneseq  ;;  %v1074_v52 = vmov 1.0  }
  0x35   :  { %956 = vset.pattern.permute.xlu0 %v1073_v0  ;;  %887 = vmatprep.subr.mxu0 %v116_v2  ;;  %v115_v3 = vld [vmem:[#allocation2 + $0x70] sm:$0xff]  ;;  %v86_v4 = vld [vmem:[%s1183_s0 + $0x8] sm:$0xff]  ;;  %v113_v6 = vld [vmem:[#allocation2 + $0x60] sm:$0xff]  ;;  %v1075_v56 = vmov 0.0   ;;  %vm312_vm3 = vcmask 130048   ;;  %vm1076_vm8 = vmmov 0  }
  0x36   :  { %90 = vperm.xlu0 %956, %v85_v1   ;;  %888 = vmatpush3.msra.mxu0 %v116_v2  ;;  %v114_v5 = vld [vmem:[#allocation2 + $0x68] sm:$0xff]  ;;  %v112_v7 = vld [vmem:[#allocation2 + $0x58] sm:$0xff]  ;;  %v222_v9 = vld [vmem:[#allocation5 + $0xf0] sm:$0xff]  ;;  %v88_v50 = vand.u32 127, %v87_v49  ;;  %v1151_v59 = vshrl.u32 %v87_v49, 7  ;;  %s1077_s11 = smov [#allocation10]  }
  0x37   :  { %889 = vmatprep.subr.mxu0 %v115_v3  ;;  %v223_v8 = vld [vmem:[#allocation5 + $0xf8] sm:$0xff]  ;;  %v221_v10 = vld [vmem:[#allocation5 + $0xe8] sm:$0xff]  ;;  %v220_v11 = vld [vmem:[#allocation5 + $0xe0] sm:$0xff]  ;;  %288 = vmatprep.mubr.f32.mxu1 %v1075_v56 }
  0x38   :  { %890 = vmatpush3.msra.mxu0 %v115_v3  ;;  %224 = vmatprep.subr.mxu1 %v223_v8  ;;  %v111_v12 = vld [vmem:[#allocation2 + $0x50] sm:$0xff]  ;;  %v219_v13 = vld [vmem:[#allocation5 + $0xd8] sm:$0xff]  ;;  %v110_v15 = vld [vmem:[#allocation2 + $0x48] sm:$0xff]  ;;  %v304_v60 = vadd.s32 1, %v1151_v59  ;;  %v303_v62 = vadd.s32 8, %v1151_v59 }
  0x39   :  { %891 = vmatprep.subr.mxu0 %v114_v5  ;;  %225 = vmatpush1.msra.mxu1 %v222_v9  ;;  %v218_v14 = vld [vmem:[#allocation5 + $0xd0] sm:$0xff]  ;;  %v217_v16 = vld [vmem:[#allocation5 + $0xc8] sm:$0xff]  ;;  %v216_v17 = vld [vmem:[#allocation5 + $0xc0] sm:$0xff] }
  0x3a   :  { %93 = vperm.xlu0 %956, %v86_v4   ;;  %892 = vmatpush3.msra.mxu0 %v114_v5  ;;  %v109_v18 = vld [vmem:[#allocation2 + $0x40] sm:$0xff]  ;;  %v215_v19 = vld [vmem:[#allocation5 + $0xb8] sm:$0xff]  ;;  %v214_v20 = vld [vmem:[#allocation5 + $0xb0] sm:$0xff]  ;;  %vm306_vm2 = vcmp.eq.s32.totalorder %v88_v50, %v304_v60  ;;  %v305_v0 = vadd.s32 1, %v303_v62  ;;  %v409_v5 = vmul.u32 8, %v304_v60 }
  0x3b   :  { %893 = vmatprep.subr.mxu0 %v113_v6  ;;  %226 = vmatprep.subr.mxu1 %v221_v10  ;;  %v108_v21 = vld [vmem:[#allocation2 + $0x38] sm:$0xff]  ;;  %v213_v22 = vld [vmem:[#allocation5 + $0xa8] sm:$0xff]  ;;  %v212_v23 = vld [vmem:[#allocation5 + $0xa0] sm:$0xff]  ;;  %v813_v61 = vsel %vm306_vm2, 1.0, %v1075_v56 }
  0x3c   :  { %894 = vmatpush3.msra.mxu0 %v113_v6  ;;  %227 = vmatpush1.msra.mxu1 %v220_v11  ;;  %v107_v24 = vld [vmem:[#allocation2 + $0x30] sm:$0xff]  ;;  %v211_v25 = vld [vmem:[#allocation5 + $0x98] sm:$0xff]  ;;  %v106_v27 = vld [vmem:[#allocation2 + $0x28] sm:$0xff]  ;;  %vm307_vm4 = vcmp.eq.s32.totalorder %v88_v50, %v305_v0  ;;  %v407_v6 = vmul.u32 8, %v1151_v59  ;;  %vm410_vm6 = vcmp.lt.s32.totalorder %v88_v50, %v409_v5 }
  0x3d   :  { %895 = vmatprep.subr.mxu0 %v112_v7  ;;  %228 = vmatprep.subr.mxu1 %v219_v13  ;;  %v210_v26 = vld [vmem:[#allocation5 + $0x90] sm:$0xff]  ;;  %v209_v28 = vld [vmem:[#allocation5 + $0x88] sm:$0xff]  ;;  %v208_v29 = vld [vmem:[#allocation5 + $0x80] sm:$0xff]  ;;  %v814_v4 = vsel %vm307_vm4, 1.0, %v1075_v56 }
  0x3e   :  { %896 = vmatpush3.msra.mxu0 %v112_v7  ;;  %229 = vmatpush1.msra.mxu1 %v218_v14  ;;  %v105_v30 = vld [vmem:[#allocation2 + $0x20] sm:$0xff]  ;;  %v207_v31 = vld [vmem:[#allocation5 + $0x78] sm:$0xff]  ;;  %v206_v32 = vld [vmem:[#allocation5 + $0x70] sm:$0xff]  ;;  %vm408_vm5 = vcmp.ge.s32.totalorder %v88_v50, %v407_v6  ;;  %v819_v7 = vadd.s32 4294967295, %v409_v5 }
  0x3f   :  { %897 = vmatprep.subr.mxu0 %v111_v12  ;;  %230 = vmatprep.subr.mxu1 %v217_v16  ;;  %v104_v33 = vld [vmem:[#allocation2 + $0x18] sm:$0xff]  ;;  %v205_v34 = vld [vmem:[#allocation5 + $0x68] sm:$0xff]  ;;  %v204_v35 = vld [vmem:[#allocation5 + $0x60] sm:$0xff] }
  0x40   :  { %898 = vmatpush3.msra.mxu0 %v111_v12  ;;  %231 = vmatpush1.msra.mxu1 %v216_v17  ;;  %v103_v36 = vld [vmem:[#allocation2 + $0x10] sm:$0xff]  ;;  %v203_v37 = vld [vmem:[#allocation5 + $0x58] sm:$0xff]  ;;  %v102_v39 = vld [vmem:[#allocation2 + $0x8] sm:$0xff]  ;;  %vm415_vm9 = vcmp.ne.s32.totalorder %v88_v50, %v819_v7 }
  0x41   :  { %899 = vmatprep.subr.mxu0 %v110_v15  ;;  %232 = vmatprep.subr.mxu1 %v215_v19  ;;  %v202_v38 = vld [vmem:[#allocation5 + $0x50] sm:$0xff]  ;;  %v201_v40 = vld [vmem:[#allocation5 + $0x48] sm:$0xff]  ;;  %v200_v41 = vld [vmem:[#allocation5 + $0x40] sm:$0xff] }
  0x42   :  { %900 = vmatpush3.msra.mxu0 %v110_v15  ;;  %233 = vmatpush1.msra.mxu1 %v214_v20  ;;  %v101_v42 = vld [vmem:[#allocation2] sm:$0xff]  ;;  %v199_v43 = vld [vmem:[#allocation5 + $0x38] sm:$0xff]  ;;  %v198_v44 = vld [vmem:[#allocation5 + $0x30] sm:$0xff] }
  0x43   :  { %901 = vmatprep.subr.mxu0 %v109_v18  ;;  %234 = vmatprep.subr.mxu1 %v213_v22  ;;  %v197_v45 = vld [vmem:[#allocation5 + $0x28] sm:$0xff]  ;;  %v196_v46 = vld [vmem:[#allocation5 + $0x20] sm:$0xff]  ;;  %v195_v47 = vld [vmem:[#allocation5 + $0x18] sm:$0xff] }
  0x44   :  { %902 = vmatpush3.msra.mxu0 %v109_v18  ;;  %235 = vmatpush1.msra.mxu1 %v212_v23  ;;  %v194_v48 = vld [vmem:[#allocation5 + $0x10] sm:$0xff]  ;;  %v193_v54 = vld [vmem:[#allocation5 + $0x8] sm:$0xff]  ;;  %v192_v55 = vld [vmem:[#allocation5] sm:$0xff] }
  0x45   :  { %903 = vmatprep.subr.mxu0 %v108_v21  ;;  %236 = vmatprep.subr.mxu1 %v211_v25  ;;  %vm411_vm7 = vmand %vm408_vm5, %vm410_vm6  ;;  %v817_v10 = vld [vmem:[%s1186_s3] ss:$0 sm:$0xff]  ;;  %v596_v19 = vld [vmem:[#allocation7 + $0xf8] sm:$0xff] }
  0x46   :  { %904 = vmatpush3.msra.mxu0 %v108_v21  ;;  %237 = vmatpush1.msra.mxu1 %v210_v26  ;;  %v818_v8 = vsel %vm411_vm7, 1.0, %v1075_v56  ;;  %vm416_vm10 = vmand %vm411_vm7, %vm415_vm9  ;;  %v595_v20 = vld [vmem:[#allocation7 + $0xf0] sm:$0xff]  ;;  %v594_v21 = vld [vmem:[#allocation7 + $0xe8] sm:$0xff] }
  0x47   :  { %905 = vmatprep.subr.mxu0 %v107_v24  ;;  %238 = vmatprep.subr.mxu1 %v209_v28  ;;  %v820_v18 = vsel %vm416_vm10, 1.0, %v1075_v56  ;;  %v593_v22 = vld [vmem:[#allocation7 + $0xe0] sm:$0xff]  ;;  %v592_v23 = vld [vmem:[#allocation7 + $0xd8] sm:$0xff]  ;;  %v590_v25 = vld [vmem:[#allocation7 + $0xc8] sm:$0xff] }
  0x48   :  { %906 = vmatpush3.msra.mxu0 %v107_v24  ;;  %239 = vmatpush1.msra.mxu1 %v208_v29  ;;  %v591_v24 = vld [vmem:[#allocation7 + $0xd0] sm:$0xff]  ;;  %v589_v26 = vld [vmem:[#allocation7 + $0xc0] sm:$0xff]  ;;  %v586_v29 = vld [vmem:[#allocation7 + $0xa8] sm:$0xff] }
  0x49   :  { %907 = vmatprep.subr.mxu0 %v106_v27  ;;  %240 = vmatprep.subr.mxu1 %v207_v31  ;;  %v587_v28 = vld [vmem:[#allocation7 + $0xb0] sm:$0xff]  ;;  %v584_v31 = vld [vmem:[#allocation7 + $0x98] sm:$0xff]  ;;  %v710_v60 = vld [vmem:[#allocation8 + $0xe0] sm:$0xff] }
  0x4a   :  { %908 = vmatpush3.msra.mxu0 %v106_v27  ;;  %241 = vmatpush1.msra.mxu1 %v206_v32  ;;  %v588_v27 = vld [vmem:[#allocation7 + $0xb8] sm:$0xff]  ;;  %v583_v32 = vld [vmem:[#allocation7 + $0x90] sm:$0xff]  ;;  %v690_v5 = vld [vmem:[#allocation8 + $0x40] sm:$0xff] }
  0x4b   :  { %909 = vmatprep.subr.mxu0 %v105_v30  ;;  %242 = vmatprep.subr.mxu1 %v205_v34  ;;  %v581_v34 = vld [vmem:[#allocation7 + $0x80] sm:$0xff]  ;;  %v567_v49 = vld [vmem:[#allocation7 + $0x10] sm:$0xff]  ;;  %v709_v62 = vld [vmem:[#allocation8 + $0xd8] sm:$0xff] }
  0x4c   :  { %910 = vmatpush3.msra.mxu0 %v105_v30  ;;  %243 = vmatpush1.msra.mxu1 %v204_v35  ;;  %v585_v30 = vld [vmem:[#allocation7 + $0xa0] sm:$0xff]  ;;  %v580_v35 = vld [vmem:[#allocation7 + $0x78] sm:$0xff]  ;;  %v708_v0 = vld [vmem:[#allocation8 + $0xd0] sm:$0xff] }
  0x4d   :  { %911 = vmatprep.subr.mxu0 %v104_v33  ;;  %244 = vmatprep.subr.mxu1 %v203_v37  ;;  %v578_v37 = vld [vmem:[#allocation7 + $0x68] sm:$0xff]  ;;  %v705_v6 = vld [vmem:[#allocation8 + $0xb8] sm:$0xff] }
  0x4e   :  { %912 = vmatpush3.msra.mxu0 %v104_v33  ;;  %245 = vmatpush1.msra.mxu1 %v202_v38  ;;  %v582_v33 = vld [vmem:[#allocation7 + $0x88] sm:$0xff]  ;;  %v577_v38 = vld [vmem:[#allocation7 + $0x60] sm:$0xff]  ;;  %v689_v7 = vld [vmem:[#allocation8 + $0x38] sm:$0xff] }
  0x4f   :  { %913 = vmatprep.subr.mxu0 %v103_v36  ;;  %246 = vmatprep.subr.mxu1 %v201_v40  ;;  %v575_v40 = vld [vmem:[#allocation7 + $0x50] sm:$0xff] }
  0x50   :  { %914 = vmatpush3.msra.mxu0 %v103_v36  ;;  %247 = vmatpush1.msra.mxu1 %v200_v41  ;;  %v579_v36 = vld [vmem:[#allocation7 + $0x70] sm:$0xff]  ;;  %v574_v41 = vld [vmem:[#allocation7 + $0x48] sm:$0xff] }
  0x51   :  { %915 = vmatprep.subr.mxu0 %v102_v39  ;;  %248 = vmatprep.subr.mxu1 %v199_v43  ;;  %v572_v43 = vld [vmem:[#allocation7 + $0x38] sm:$0xff] }
  0x52   :  { %916 = vmatpush3.msra.mxu0 %v102_v39  ;;  %249 = vmatpush1.msra.mxu1 %v198_v44  ;;  %v576_v39 = vld [vmem:[#allocation7 + $0x58] sm:$0xff]  ;;  %v571_v44 = vld [vmem:[#allocation7 + $0x30] sm:$0xff] }
  0x53   :  { %917 = vmatprep.subr.mxu0 %v101_v42  ;;  %250 = vmatprep.subr.mxu1 %v197_v45  ;;  %v570_v45 = vld [vmem:[#allocation7 + $0x28] sm:$0xff] }
  0x54   :  { %918 = vmatpush3.msra.mxu0 %v101_v42  ;;  %251 = vmatpush1.msra.mxu1 %v196_v46  ;;  %v573_v42 = vld [vmem:[#allocation7 + $0x40] sm:$0xff] }
  0x55   :  { %252 = vmatprep.subr.mxu1 %v195_v47  ;;  %v569_v46 = vld [vmem:[#allocation7 + $0x20] sm:$0xff]  ;;  %v568_v47 = vld [vmem:[#allocation7 + $0x18] sm:$0xff] }
  0x56   :  { %253 = vmatpush1.msra.mxu1 %v194_v48 }
  0x57   :  { %254 = vmatprep.subr.mxu1 %v193_v54  ;;  %v697_v54 = vld [vmem:[#allocation8 + $0x78] sm:$0xff] }
  0x58   :  { %255 = vmatpush1.msra.mxu1 %v192_v55  ;;  %v712_v55 = vld [vmem:[#allocation8 + $0xf0] sm:$0xff] }
  0x59   :  { %936 = vmatprep.subr.mxu1 %v1075_v56 }
  0xb1   :  { %v91_v51 = vpop.permute.xlu0 %90 }
  0xb2   :  { %vm95_vm0 = vcmp.eq.s32.totalorder %v88_v50, %v91_v51  ;;  %v566_v51 = vld [vmem:[#allocation7 + $0x8] sm:$0xff] }
  0xb3   :  { %919 = vmatprep.mubr.msk.f32.mxu0 %vm95_vm0, %v1074_v52 }
  0xb5   :  { %v94_v53 = vpop.permute.xlu0 %93 }
  0xb6   :  { %vm96_vm1 = vcmp.eq.s32.totalorder %v88_v50, %v94_v53  ;;  %v713_v53 = vld [vmem:[#allocation8 + $0xf8] sm:$0xff] }
  0xb7   :  { %920 = vmatmul.mubr.msk.f32.vlgmr.msra.gmra.mxu0 %vm96_vm1, %v1074_v52  ;;  %v565_v52 = vld [vmem:[#allocation7] sm:$0xff] }
  0xb8   :  { %926 = vmatprep.mubr.msk.f32.mxu0 %vm312_vm3, %v813_v61  ;;  %v694_v61 = vld [vmem:[#allocation8 + $0x60] sm:$0xff] }
 0x177   :  { %v921_v57 = vpop.f32.mrf.mxu0 }
 0x179   :  { %v183_v58 = vpop.f32.mrf.mxu0 }
 0x17a   :  { %289 = vmatmul.mubr.f32.vlgmr.msra.gmra.mxu1 %v183_v58 }
 0x17b   :  { %937 = vmatpush3.msra.mxu1 %v921_v57  ;;  %294 = vmatprep.mubr.f32.mxu1 %v1075_v56 }
 0x17c   :  { %938 = vmatprep.subr.mxu1 %v1075_v56 }
 0x17d   :  { %939 = vmatpush3.msra.mxu1 %v183_v58  ;;  %v695_v58 = vld [vmem:[#allocation8 + $0x68] sm:$0xff] }
 0x17e   :  { %295 = vmatmul.mubr.f32.gmra.mxu1 %v921_v57  ;;  %852 = vmatprep.subr.mxu1 %v713_v53  ;;  %v711_v57 = vld [vmem:[#allocation8 + $0xe8] sm:$0xff] }
 0x17f   :  { %940 = vmatprep.mubr.msk.f32.mxu1 %vm1076_vm8, %v1075_v56 }
 0x182   :  { %941 = vmatmul.mubr.msk.f32.vlgmr.msra.gmra.mxu1 %vm312_vm3, %v818_v8  ;;  %v704_v8 = vld [vmem:[#allocation8 + $0xb0] sm:$0xff] }
 0x183   :  { %853 = vmatpush3.msra.mxu1 %v697_v54 }
 0x184   :  { %854 = vmatprep.subr.mxu1 %v712_v55 }
 0x23a   :  { %v290_v63 = vpop.f32.mrf.mxu1 }
 0x23c   :  { %v292_v1 = vpop.f32.mrf.mxu1 }
 0x23e   :  { %v296_v2 = vpop.f32.mrf.mxu1 }
 0x240   :  { %v298_v3 = vpop.f32.mrf.mxu1 }
 0x241   :  { %922 = vmatprep.subr.mxu0 %v298_v3 }
 0x242   :  { %923 = vmatpush3.msra.mxu0 %v298_v3  ;;  %v561_v48 = vpop.f32.mrf.mxu1  ;;  %v691_v3 = vld [vmem:[#allocation8 + $0x48] sm:$0xff] }
 0x243   :  { %924 = vmatprep.subr.mxu0 %v292_v1 }
 0x244   :  { %925 = vmatpush3.msra.mxu0 %v292_v1  ;;  %v942_v50 = vpop.f32.mrf.mxu1  ;;  %v692_v1 = vld [vmem:[#allocation8 + $0x50] sm:$0xff] }
 0x245   :  { %927 = vmatmul.mubr.msk.f32.vlgmr.msra.gmra.mxu0 %vm312_vm3, %v814_v4  ;;  %929 = vmatprep.subr.mxu0 %v1075_v56  ;;  %v706_v4 = vld [vmem:[#allocation8 + $0xc0] sm:$0xff] }
 0x246   :  { %933 = vmatprep.mubr.msk.f32.mxu0 %vm1076_vm8, %v1075_v56 }
 0x305   :  { %v928_v9 = vpop.f32.mrf.mxu0 }
 0x306   :  { %v395_v11 = vadd.f32 %v928_v9, %v296_v2  ;;  %v707_v2 = vld [vmem:[#allocation8 + $0xc8] sm:$0xff]  ;;  %v688_v9 = vld [vmem:[#allocation8 + $0x30] sm:$0xff] }
 0x307   :  { %v385_v12 = vpop.f32.mrf.mxu0 }
 0x308   :  { %v404_v13 = vadd.f32 %v817_v10, %v395_v11  ;;  %v394_v14 = vadd.f32 %v385_v12, %v290_v63  ;;  %v693_v63 = vld [vmem:[#allocation8 + $0x58] sm:$0xff]  ;;  %v687_v11 = vld [vmem:[#allocation8 + $0x28] sm:$0xff]  ;;  %v702_v12 = vld [vmem:[#allocation8 + $0xa0] sm:$0xff] }
 0x30a   :  { %v406_v15 = vmax.f32 %v404_v13, 0.0  ;;  %v403_v16 = vadd.f32 %v817_v10, %v394_v14  ;;  %v703_v10 = vld [vmem:[#allocation8 + $0xa8] sm:$0xff]  ;;  %v686_v13 = vld [vmem:[#allocation8 + $0x20] sm:$0xff] }
 0x30c   :  { %v405_v17 = vmax.f32 %v403_v16, 0.0  ;;  %930 = vmatpush3.msra.mxu0 %v406_v15 }
 0x30d   :  { %931 = vmatprep.subr.mxu0 %v1075_v56 }
 0x30e   :  { %932 = vmatpush3.msra.mxu0 %v405_v17  ;;  %v701_v17 = vld [vmem:[#allocation8 + $0x98] sm:$0xff] }
 0x30f   :  { %934 = vmatmul.mubr.msk.f32.vlgmr.msra.gmra.mxu0 %vm312_vm3, %v820_v18  ;;  %609 = vmatprep.subr.mxu0 %v596_v19  ;;  %v685_v18 = vld [vmem:[#allocation8 + $0x18] sm:$0xff]  ;;  %v700_v19 = vld [vmem:[#allocation8 + $0x90] sm:$0xff] }
 0x310   :  { %610 = vmatpush1.msra.mxu0 %v595_v20  ;;  %673 = vmatprep.mubr.f32.mxu0 %v1075_v56  ;;  %v696_v56 = vld [vmem:[#allocation8 + $0x70] sm:$0xff] }
 0x311   :  { %611 = vmatprep.subr.mxu0 %v594_v21  ;;  %855 = vmatpush3.msra.mxu1 %v696_v56  ;;  %v684_v20 = vld [vmem:[#allocation8 + $0x10] sm:$0xff]  ;;  %v699_v21 = vld [vmem:[#allocation8 + $0x88] sm:$0xff] }
 0x312   :  { %612 = vmatpush1.msra.mxu0 %v593_v22  ;;  %856 = vmatprep.subr.mxu1 %v711_v57  ;;  %v683_v22 = vld [vmem:[#allocation8 + $0x8] sm:$0xff] }
 0x313   :  { %613 = vmatprep.subr.mxu0 %v592_v23  ;;  %857 = vmatpush3.msra.mxu1 %v695_v58  ;;  %v698_v23 = vld [vmem:[#allocation8 + $0x80] sm:$0xff] }
 0x314   :  { %614 = vmatpush1.msra.mxu0 %v591_v24  ;;  %858 = vmatprep.subr.mxu1 %v710_v60  ;;  %v682_v24 = vld [vmem:[#allocation8] sm:$0xff] }
 0x315   :  { %615 = vmatprep.subr.mxu0 %v590_v25  ;;  %859 = vmatpush3.msra.mxu1 %v694_v61  ;;  %v601_v25 = vsub.s32 0, %v1151_v59 }
 0x316   :  { %616 = vmatpush1.msra.mxu0 %v589_v26  ;;  %860 = vmatprep.subr.mxu1 %v709_v62  ;;  %v597_v26 = vld [vmem:[%s1188_s5] sm:$0x3]  ;;  %s798_s5 = sshll.u32 %s1077_s11, 4  ;;  %s799_s5 = int_to_ptr.vmem [resolvable:$true] %s798_s5 }
 0x317   :  { %617 = vmatprep.subr.mxu0 %v588_v27  ;;  %861 = vmatpush3.msra.mxu1 %v693_v63  ;;  %v605_v27 = vsub.s32 1, %v1151_v59  ;;  %s1037_s12 = scalar_lea.vmem %s799_s5, 32  ;;  %p1042_p7 = scmp.lt.s32.totalorder %s799_s5, %s799_s5 }
 0x318   :  { %618 = vmatpush1.msra.mxu0 %v587_v28  ;;  %862 = vmatprep.subr.mxu1 %v708_v0  ;;  %v602_v28 = vrot.slane %v597_v26, %v601_v25  ;;  %p1038_p6 = scmp.ne.s32.totalorder %s799_s5, %s1037_s12  ;;  %p1043_p8 = scmp.lt.s32.totalorder %s1037_s12, %s1037_s12 }
 0x319   :  { %619 = vmatprep.subr.mxu0 %v586_v29  ;;  %863 = vmatpush3.msra.mxu1 %v692_v1  ;;  %v606_v29 = vrot.slane %v597_v26, %v605_v27 }
 0x31a   :  { %620 = vmatpush1.msra.mxu0 %v585_v30  ;;  %864 = vmatprep.subr.mxu1 %v707_v2  ;;  %p1044_p9 = por %p1043_p8, %p1042_p7 }
 0x31b   :  { %621 = vmatprep.subr.mxu0 %v584_v31  ;;  %865 = vmatpush3.msra.mxu1 %v691_v3 }
 0x31c   :  { %622 = vmatpush1.msra.mxu0 %v583_v32  ;;  %866 = vmatprep.subr.mxu1 %v706_v4  ;;  %p1045_p10 = pnand %p1044_p9, %p1038_p6 }
 0x31d   :  { %623 = vmatprep.subr.mxu0 %v582_v33  ;;  %867 = vmatpush3.msra.mxu1 %v690_v5 }
 0x31e   :  { %624 = vmatpush1.msra.mxu0 %v581_v34  ;;  %868 = vmatprep.subr.mxu1 %v705_v6 }
 0x31f   :  { %625 = vmatprep.subr.mxu0 %v580_v35  ;;  %869 = vmatpush3.msra.mxu1 %v689_v7 }
 0x320   :  { %626 = vmatpush1.msra.mxu0 %v579_v36  ;;  %870 = vmatprep.subr.mxu1 %v704_v8 }
 0x321   :  { %627 = vmatprep.subr.mxu0 %v578_v37  ;;  %871 = vmatpush3.msra.mxu1 %v688_v9  ;;  %v823_v37 = vld [vmem:[%s1190_s7] ss:$0 sm:$0xff] }
 0x322   :  { %628 = vmatpush1.msra.mxu0 %v577_v38  ;;  %872 = vmatprep.subr.mxu1 %v703_v10 }
 0x323   :  { %629 = vmatprep.subr.mxu0 %v576_v39  ;;  %873 = vmatpush3.msra.mxu1 %v687_v11 }
 0x324   :  { %630 = vmatpush1.msra.mxu0 %v575_v40  ;;  %874 = vmatprep.subr.mxu1 %v702_v12 }
 0x325   :  { %631 = vmatprep.subr.mxu0 %v574_v41  ;;  %875 = vmatpush3.msra.mxu1 %v686_v13 }
 0x326   :  { %632 = vmatpush1.msra.mxu0 %v573_v42  ;;  %876 = vmatprep.subr.mxu1 %v701_v17 }
 0x327   :  { %633 = vmatprep.subr.mxu0 %v572_v43  ;;  %877 = vmatpush3.msra.mxu1 %v685_v18 }
 0x328   :  { %634 = vmatpush1.msra.mxu0 %v571_v44  ;;  %878 = vmatprep.subr.mxu1 %v700_v19 }
 0x329   :  { %635 = vmatprep.subr.mxu0 %v570_v45  ;;  %879 = vmatpush3.msra.mxu1 %v684_v20 }
 0x32a   :  { %636 = vmatpush1.msra.mxu0 %v569_v46  ;;  %880 = vmatprep.subr.mxu1 %v699_v21 }
 0x32b   :  { %637 = vmatprep.subr.mxu0 %v568_v47  ;;  %881 = vmatpush3.msra.mxu1 %v683_v22 }
 0x32c   :  { %638 = vmatpush1.msra.mxu0 %v567_v49  ;;  %882 = vmatprep.subr.mxu1 %v698_v23 }
 0x32d   :  { %639 = vmatprep.subr.mxu0 %v566_v51  ;;  %883 = vmatpush3.msra.mxu1 %v682_v24 }
 0x32e   :  { %640 = vmatpush1.msra.mxu0 %v565_v52 }
 0x3cf   :  { %v488_v14 = vpop.f32.mrf.mxu0 }
 0x3d0   :  { %v562_v15 = vadd.f32 %v561_v48, %v488_v14 }
 0x3d1   :  { %v935_v16 = vpop.f32.mrf.mxu0 }
 0x3d2   :  { %674 = vmatmul.mubr.f32.vlgmr.msra.gmra.mxu0 %v562_v15 }
 0x492   :  { %v675_v30 = vpop.f32.mrf.mxu0 }
 0x493   :  { %v676_v31 = vadd.f32 %v675_v30, %v602_v28 }
 0x494   :  { %v677_v32 = vpop.f32.mrf.mxu0 }
 0x495   :  { %v678_v33 = vadd.f32 %v677_v32, %v606_v29  ;;  %v680_v35 = vmax.f32 %v676_v31, 0.0 }
 0x497   :  { %v681_v34 = vmax.f32 %v678_v33, 0.0 }
 0x499   :  { %785 = vmatprep.mubr.f32.mxu1 %v681_v34 }
 0x49a   :  { %786 = vmatmul.mubr.f32.vlgmr.msra.gmra.mxu1 %v680_v35 }
 0x55a   :  { %v884_v36 = vpop.f32.mrf.mxu1 }
 0x55c   :  { %v885_v38 = vpop.f32.mrf.mxu1 }
 0x55d   :  { %v886_v39 = vadd.f32 %v885_v38, %v884_v36 }
 0x55f   :  { %v788_v59 = vadd.f32 %v886_v39, %v823_v37 }
 0x561   :  { %791 = vst [vmem:[#allocation10] sm:$0x3] %v788_v59 }
 0x562   :  { %1048 = shalt.err (!%p1045_p10)
}
 0x563   :  { %801 = dma.vmem_to_hbm [thread:$0]  %s799_s5, 32, %s1191_s8, [#allocation4]  }
 0x564   :  { %1063 = dma.done.wait [#allocation4], 32  }
 0x565   :  { %1064 = vsyncadd [#allocation4], 4294967264 }
 0x566   :  { %805 = vsyncpa [#allocation3], 1 }
 0x567   :  { %806 = vsyncpa [#allocation6], 1 }
 0x568   :  { %807 = vsyncpa [#allocation9], 1 }
 0x569   :  { %808 = vsyncpa [#allocation4], 1 }

</bundles_post_ra>
